<compile_context>
chip_gen: v7x
topology: tpu7x:2x2x1
jax: 0.10.0
libtpu: 0.0.40
codegen_flags: <defaults>
</compile_context>

<pallas_src>
import functools

import jax
import jax.numpy as jnp
from jax.experimental import pallas as pl
from jax.experimental.pallas import tpu as pltpu

LANES = 128      # lane width; all param columns are zero-padded to this
BIAS_ROWS = 16   # bias block rows (16 keeps every slab section bf16-tile aligned)


def _round_up(n, m):
    return (n + m - 1) // m * m


def _ppo_network_kernel(x_ref, p_ref, out_ref, *, in_dim_pad, out_dim):
    """Fused fea_net + actor + critic forward for one batch tile.

    Param slab layout (bf16, all columns zero-padded to LANES):
      rows [0, in_dim_pad)           : W1  (in_dim -> hid)
      rows [r_b,  r_b + BIAS_ROWS)   : row0=b1, row1=b2, row2=bh, row3=bo
      rows [r_w2, r_w2 + LANES)      : W2  (hid -> hid), zero-padded
      rows [r_wh, r_wh + LANES)      : WH = [Wa1 | Wc1]        (hid -> 2*hid)
      rows [r_wo, r_wo + LANES)      : WO = blockdiag(Wa2,Wc2) (2*hid -> out_dim+1)
    Zero padding keeps the math exact: padded activation lanes stay 0 through
    every Linear+ReLU, and padded weight rows multiply those zero lanes.
    """
    r_b = in_dim_pad
    r_w2 = r_b + BIAS_ROWS
    r_wh = r_w2 + LANES
    r_wo = r_wh + LANES

    # bf16 MXU operands, f32 accumulation & elementwise math.
    x = x_ref[...].astype(jnp.bfloat16)                        # (TB, in_dim_pad)
    biases = p_ref[r_b:r_b + BIAS_ROWS, :].astype(jnp.float32)  # (16, LANES)
    b1 = biases[0:1, :]
    b2 = biases[1:2, :]
    bh = biases[2:3, :]
    bo = biases[3:4, :]

    # ---- fea_net: Linear -> ReLU -> Linear -> ReLU -------------------------
    h1 = jnp.dot(x, p_ref[0:in_dim_pad, :],
                 preferred_element_type=jnp.float32) + b1
    h1 = jnp.maximum(h1, 0.0).astype(jnp.bfloat16)
    fea = jnp.dot(h1, p_ref[r_w2:r_w2 + LANES, :],
                  preferred_element_type=jnp.float32) + b2
    fea = jnp.maximum(fea, 0.0).astype(jnp.bfloat16)

    # ---- fused actor/critic hidden layer ------------------------------------
    hc = jnp.dot(fea, p_ref[r_wh:r_wh + LANES, :],
                 preferred_element_type=jnp.float32) + bh
    hc = jnp.maximum(hc, 0.0).astype(jnp.bfloat16)

    # ---- fused logits + value (block-diagonal output weights) ---------------
    z = jnp.dot(hc, p_ref[r_wo:r_wo + LANES, :],
                preferred_element_type=jnp.float32) + bo       # (TB, LANES), f32

    # Softmax over the first `out_dim` lanes only (rest are padding / value).
    lane = jax.lax.broadcasted_iota(jnp.int32, z.shape, 1)
    is_logit = lane < out_dim
    zl = jnp.where(is_logit, z, jnp.float32(-1e30))
    m = jnp.max(zl, axis=-1, keepdims=True)
    e = jnp.where(is_logit, jnp.exp(zl - m), 0.0)
    denom = jnp.sum(e, axis=-1, keepdims=True)
    probs = e / denom    # exact divide: probs sum to 1 to f32 rounding

    # Lane-dense output: [probs | value | zeros]
    out = jnp.where(is_logit, probs, jnp.where(lane == out_dim, z, 0.0))
    out_ref[...] = out.astype(out_ref.dtype)


def pack_params(params, in_dim, hid, out_dim):
    """Pack all weights/biases into one (R, 128) bf16 slab (done once, in XLA)."""
    assert hid <= LANES and 2 * hid <= LANES and out_dim + 1 <= LANES
    in_dim_pad = _round_up(in_dim, 16)

    def padto(a, rows, cols=LANES):
        return jnp.pad(a, ((0, rows - a.shape[0]), (0, cols - a.shape[1])))

    # fused actor/critic hidden layer: WH = [Wa1 | Wc1], bh = [ba1 | bc1]
    wh = jnp.concatenate([params["wa1"], params["wc1"]], axis=1)   # (hid, 2*hid)
    bh = jnp.concatenate([params["ba1"], params["bc1"]], axis=1)   # (1, 2*hid)

    # fused output layer: block-diagonal (2*hid, out_dim+1)
    wo = jnp.zeros((2 * hid, out_dim + 1), jnp.float32)
    wo = wo.at[:hid, :out_dim].set(params["wa2"])
    wo = wo.at[hid:, out_dim:].set(params["wc2"])
    bo = jnp.concatenate([params["ba2"], params["bc2"]], axis=1)   # (1, out_dim+1)

    biases = jnp.zeros((BIAS_ROWS, LANES), jnp.float32)
    biases = biases.at[0, :hid].set(params["b1"][0])
    biases = biases.at[1, :hid].set(params["b2"][0])
    biases = biases.at[2, :2 * hid].set(bh[0])
    biases = biases.at[3, :out_dim + 1].set(bo[0])

    slab = jnp.concatenate(
        [
            padto(params["w1"], in_dim_pad),   # (in_dim_pad, 128)
            biases,                            # (16, 128)
            padto(params["w2"], LANES),        # (128, 128)
            padto(wh, LANES),                  # (128, 128)
            padto(wo, LANES),                  # (128, 128)
        ],
        axis=0,
    ).astype(jnp.bfloat16)                     # bf16 slab: halves param DMA
    return slab


def _choose_tile(B, max_tile):
    """Batch tile: big enough to amortize per-step overhead, but >=2 grid
    steps whenever possible so v7x can shard the 'parallel' axis over both
    TensorCores."""
    b8 = _round_up(B, 8)
    if b8 < 16:
        return b8
    half = _round_up(-(-b8 // 2), 8)
    return min(max_tile, half)


def ppo_network_forward(x, slab, *, in_dim, out_dim, max_tile=2048):
    """x: (B, in_dim) f32. slab: packed bf16 params.
    Returns (probs (B,out_dim) f32, value (B,1) f32)."""
    B = x.shape[0]
    in_dim_pad = _round_up(in_dim, 16)
    if x.shape[1] != in_dim_pad:
        x = jnp.pad(x, ((0, 0), (0, in_dim_pad - x.shape[1])))

    TB = _choose_tile(B, max_tile)
    Bp = _round_up(_round_up(B, 8), TB)
    if Bp != B:
        x = jnp.pad(x, ((0, Bp - B), (0, 0)))
    grid = Bp // TB

    flops = 2 * Bp * (in_dim_pad + 3 * LANES) * LANES
    bytes_accessed = (Bp * in_dim_pad * 4                 # x read
                      + int(slab.size) * slab.dtype.itemsize  # slab read
                      + Bp * LANES * 4)                    # output write

    out = pl.pallas_call(
        functools.partial(_ppo_network_kernel,
                          in_dim_pad=in_dim_pad, out_dim=out_dim),
        out_shape=jax.ShapeDtypeStruct((Bp, LANES), jnp.float32),
        grid=(grid,),
        in_specs=[
            pl.BlockSpec((TB, in_dim_pad), lambda i: (i, 0)),
            # Constant block index -> single DMA, slab stays VMEM-resident.
            pl.BlockSpec(slab.shape, lambda i: (0, 0)),
        ],
        out_specs=pl.BlockSpec((TB, LANES), lambda i: (i, 0)),
        compiler_params=pltpu.CompilerParams(
            dimension_semantics=("parallel",),   # shard batch over TCs (v7x)
        ),
        cost_estimate=pl.CostEstimate(
            flops=flops,
            transcendentals=Bp * LANES,
            bytes_accessed=bytes_accessed,
        ),
    )(x, slab)

    probs = out[:B, :out_dim]
    value = out[:B, out_dim:out_dim + 1]
    return probs, value


def init_params(key, in_dim, hid_dim, out_dim):
    """Deterministic PyTorch-style init: U(-1/sqrt(fan_in), 1/sqrt(fan_in))."""
    def linear(k, fan_in, fan_out):
        kw, kb = jax.random.split(k)
        bound = 1.0 / jnp.sqrt(jnp.float32(fan_in))
        w = jax.random.uniform(kw, (fan_in, fan_out), jnp.float32, -bound, bound)
        b = jax.random.uniform(kb, (1, fan_out), jnp.float32, -bound, bound)
        return w, b

    keys = jax.random.split(key, 6)
    w1, b1 = linear(keys[0], in_dim, hid_dim)
    w2, b2 = linear(keys[1], hid_dim, hid_dim)
    wa1, ba1 = linear(keys[2], hid_dim, hid_dim)
    wa2, ba2 = linear(keys[3], hid_dim, out_dim)
    wc1, bc1 = linear(keys[4], hid_dim, hid_dim)
    wc2, bc2 = linear(keys[5], hid_dim, 1)
    return dict(w1=w1, b1=b1, w2=w2, b2=b2,
                wa1=wa1, ba1=ba1, wa2=wa2, ba2=ba2,
                wc1=wc1, bc1=bc1, wc2=wc2, bc2=bc2)


def reference_forward(x, p):
    relu = lambda v: jnp.maximum(v, 0.0)
    fea = relu(relu(x @ p["w1"] + p["b1"]) @ p["w2"] + p["b2"])
    logits = relu(fea @ p["wa1"] + p["ba1"]) @ p["wa2"] + p["ba2"]
    probs = jax.nn.softmax(logits, axis=-1)
    value = relu(fea @ p["wc1"] + p["bc1"]) @ p["wc2"] + p["bc2"]
    return probs, value


if __name__ == "__main__":
    in_dim, hid_dim, out_dim = 16, 32, 8

    key = jax.random.PRNGKey(0)
    kx, kp, kx2 = jax.random.split(key, 3)
    params = init_params(kp, in_dim, hid_dim, out_dim)
    slab = pack_params(params, in_dim, hid_dim, out_dim)

    # ---- small batch (single grid step) -------------------------------------
    B = 8
    x = jax.random.normal(kx, (B, in_dim), dtype=jnp.float32)
    probs, value = ppo_network_forward(x, slab, in_dim=in_dim, out_dim=out_dim)
    jax.block_until_ready((probs, value))

    ref_probs, ref_value = reference_forward(x, params)
    assert probs.shape == (B, out_dim) and value.shape == (B, 1)
    # tolerances account for bf16 MXU operands (f32 accumulation / elementwise)
    assert jnp.allclose(probs, ref_probs, atol=1e-2, rtol=1e-2)
    assert jnp.allclose(value, ref_value, atol=3e-2, rtol=3e-2)
    assert jnp.allclose(jnp.sum(probs, axis=-1), 1.0, atol=1e-5)

    # ---- larger batch exercising the multi-step (v7x-parallel) grid path ----
    B2 = 40
    x2 = jax.random.normal(kx2, (B2, in_dim), dtype=jnp.float32)
    probs2, value2 = ppo_network_forward(x2, slab, in_dim=in_dim, out_dim=out_dim)
    jax.block_until_ready((probs2, value2))
    ref_probs2, ref_value2 = reference_forward(x2, params)
    assert probs2.shape == (B2, out_dim) and value2.shape == (B2, 1)
    assert jnp.allclose(probs2, ref_probs2, atol=1e-2, rtol=1e-2)
    assert jnp.allclose(value2, ref_value2, atol=3e-2, rtol=3e-2)
    assert jnp.allclose(jnp.sum(probs2, axis=-1), 1.0, atol=1e-5)

    # TODO(synk): torch.distributions.Categorical has no kernel equivalent;
    # the kernel returns the softmax probs the distribution would wrap.
    print("KERNEL_OK")
</pallas_src>

<mosaic_0001>
module attributes {stable_mosaic.version = 11 : i64} {
  func.func @_ppo_network_kernel(%arg0: i32, %arg1: memref<8x16xf32, #tpu.memory_space<vmem>>, %arg2: memref<416x128xbf16, #tpu.memory_space<vmem>>, %arg3: memref<8x128xf32, #tpu.memory_space<vmem>>) attributes {dimension_semantics = [#tpu.dimension_semantics<parallel>], iteration_bounds = array<i64: 1>, scalar_prefetch = 0 : i64, scratch_operands = 0 : i64, tpu.core_type = #tpu.core_type<tc>, window_params = [{transform_indices = @transform_0, window_bounds = array<i64: 8, 16>}, {pipeline_mode = #tpu.pipeline_mode<synchronous>, transform_indices = @transform_1, window_bounds = array<i64: 416, 128>}, {transform_indices = @transform_2, window_bounds = array<i64: 8, 128>}]} {
    %c0 = arith.constant 0 : index
    %c0_0 = arith.constant 0 : index
    %0 = vector.load %arg1[%c0, %c0_0] : memref<8x16xf32, #tpu.memory_space<vmem>>, vector<8x16xf32>
    %1 = arith.truncf %0 : vector<8x16xf32> to vector<8x16xbf16>
    %c16 = arith.constant 16 : index
    %c0_1 = arith.constant 0 : index
    %2 = vector.load %arg2[%c16, %c0_1] : memref<416x128xbf16, #tpu.memory_space<vmem>>, vector<16x128xbf16>
    %3 = arith.extf %2 : vector<16x128xbf16> to vector<16x128xf32>
    %4 = vector.extract_strided_slice %3 {offsets = [0, 0], sizes = [1, 128], strides = [1, 1]} : vector<16x128xf32> to vector<1x128xf32>
    %5 = vector.extract_strided_slice %3 {offsets = [1, 0], sizes = [1, 128], strides = [1, 1]} : vector<16x128xf32> to vector<1x128xf32>
    %6 = vector.extract_strided_slice %3 {offsets = [2, 0], sizes = [1, 128], strides = [1, 1]} : vector<16x128xf32> to vector<1x128xf32>
    %7 = vector.extract_strided_slice %3 {offsets = [3, 0], sizes = [1, 128], strides = [1, 1]} : vector<16x128xf32> to vector<1x128xf32>
    %c0_2 = arith.constant 0 : index
    %c0_3 = arith.constant 0 : index
    %8 = vector.load %arg2[%c0_2, %c0_3] : memref<416x128xbf16, #tpu.memory_space<vmem>>, vector<16x128xbf16>
    %cst = arith.constant dense<0.000000e+00> : vector<8x128xf32>
    %9 = tpu.matmul %1, %8, %cst {dimension_numbers = #tpu.dot_dimension_numbers<[1], [0], [0], [1], [0, 0, 1, 1], [], []>} : vector<8x16xbf16>, vector<16x128xbf16>, vector<8x128xf32> -> vector<8x128xf32>
    %10 = vector.broadcast %4 : vector<1x128xf32> to vector<8x128xf32>
    %11 = arith.addf %9, %10 : vector<8x128xf32>
    %cst_4 = arith.constant 0.000000e+00 : f32
    %12 = vector.broadcast %cst_4 : f32 to vector<8x128xf32>
    %13 = arith.maximumf %11, %12 : vector<8x128xf32>
    %14 = arith.truncf %13 : vector<8x128xf32> to vector<8x128xbf16>
    %c32 = arith.constant 32 : index
    %c0_5 = arith.constant 0 : index
    %15 = vector.load %arg2[%c32, %c0_5] : memref<416x128xbf16, #tpu.memory_space<vmem>>, vector<128x128xbf16>
    %cst_6 = arith.constant dense<0.000000e+00> : vector<8x128xf32>
    %16 = tpu.matmul %14, %15, %cst_6 {dimension_numbers = #tpu.dot_dimension_numbers<[1], [0], [0], [1], [0, 0, 1, 1], [], []>} : vector<8x128xbf16>, vector<128x128xbf16>, vector<8x128xf32> -> vector<8x128xf32>
    %17 = vector.broadcast %5 : vector<1x128xf32> to vector<8x128xf32>
    %18 = arith.addf %16, %17 : vector<8x128xf32>
    %cst_7 = arith.constant 0.000000e+00 : f32
    %19 = vector.broadcast %cst_7 : f32 to vector<8x128xf32>
    %20 = arith.maximumf %18, %19 : vector<8x128xf32>
    %21 = arith.truncf %20 : vector<8x128xf32> to vector<8x128xbf16>
    %c160 = arith.constant 160 : index
    %c0_8 = arith.constant 0 : index
    %22 = vector.load %arg2[%c160, %c0_8] : memref<416x128xbf16, #tpu.memory_space<vmem>>, vector<128x128xbf16>
    %cst_9 = arith.constant dense<0.000000e+00> : vector<8x128xf32>
    %23 = tpu.matmul %21, %22, %cst_9 {dimension_numbers = #tpu.dot_dimension_numbers<[1], [0], [0], [1], [0, 0, 1, 1], [], []>} : vector<8x128xbf16>, vector<128x128xbf16>, vector<8x128xf32> -> vector<8x128xf32>
    %24 = vector.broadcast %6 : vector<1x128xf32> to vector<8x128xf32>
    %25 = arith.addf %23, %24 : vector<8x128xf32>
    %cst_10 = arith.constant 0.000000e+00 : f32
    %26 = vector.broadcast %cst_10 : f32 to vector<8x128xf32>
    %27 = arith.maximumf %25, %26 : vector<8x128xf32>
    %28 = arith.truncf %27 : vector<8x128xf32> to vector<8x128xbf16>
    %c288 = arith.constant 288 : index
    %c0_11 = arith.constant 0 : index
    %29 = vector.load %arg2[%c288, %c0_11] : memref<416x128xbf16, #tpu.memory_space<vmem>>, vector<128x128xbf16>
    %cst_12 = arith.constant dense<0.000000e+00> : vector<8x128xf32>
    %30 = tpu.matmul %28, %29, %cst_12 {dimension_numbers = #tpu.dot_dimension_numbers<[1], [0], [0], [1], [0, 0, 1, 1], [], []>} : vector<8x128xbf16>, vector<128x128xbf16>, vector<8x128xf32> -> vector<8x128xf32>
    %31 = vector.broadcast %7 : vector<1x128xf32> to vector<8x128xf32>
    %32 = arith.addf %30, %31 : vector<8x128xf32>
    %33 = tpu.iota {dimensions = array<i32: 1>} : vector<8x128xi32>
    %c8_i32 = arith.constant 8 : i32
    %34 = vector.broadcast %c8_i32 : i32 to vector<8x128xi32>
    %35 = arith.cmpi slt, %33, %34 : vector<8x128xi32>
    %cst_13 = arith.constant -1.000000e+30 : f32
    %36 = vector.broadcast %cst_13 : f32 to vector<8x128xf32>
    %37 = arith.select %35, %32, %36 : vector<8x128xi1>, vector<8x128xf32>
    %cst_14 = arith.constant dense<0xFF800000> : vector<8xf32>
    %38 = vector.multi_reduction <maximumf>, %37, %cst_14 [1] : vector<8x128xf32> to vector<8xf32>
    %39 = vector.shape_cast %38 : vector<8xf32> to vector<8x1xf32>
    %40 = vector.broadcast %39 : vector<8x1xf32> to vector<8x128xf32>
    %41 = arith.subf %37, %40 : vector<8x128xf32>
    %42 = math.exp %41 : vector<8x128xf32>
    %cst_15 = arith.constant 0.000000e+00 : f32
    %43 = vector.broadcast %cst_15 : f32 to vector<8x128xf32>
    %44 = arith.select %35, %42, %43 : vector<8x128xi1>, vector<8x128xf32>
    %cst_16 = arith.constant dense<0.000000e+00> : vector<8xf32>
    %45 = vector.multi_reduction <add>, %44, %cst_16 [1] : vector<8x128xf32> to vector<8xf32>
    %46 = vector.shape_cast %45 : vector<8xf32> to vector<8x1xf32>
    %47 = vector.broadcast %46 : vector<8x1xf32> to vector<8x128xf32>
    %48 = arith.divf %44, %47 : vector<8x128xf32>
    %c8_i32_17 = arith.constant 8 : i32
    %49 = vector.broadcast %c8_i32_17 : i32 to vector<8x128xi32>
    %50 = arith.cmpi eq, %33, %49 : vector<8x128xi32>
    %cst_18 = arith.constant 0.000000e+00 : f32
    %51 = vector.broadcast %cst_18 : f32 to vector<8x128xf32>
    %52 = arith.select %50, %32, %51 : vector<8x128xi1>, vector<8x128xf32>
    %53 = arith.select %35, %48, %52 : vector<8x128xi1>, vector<8x128xf32>
    %c0_19 = arith.constant 0 : index
    %c0_20 = arith.constant 0 : index
    %54 = vector.load %arg3[%c0_19, %c0_20] : memref<8x128xf32, #tpu.memory_space<vmem>>, vector<8x128xf32>
    tpu.vector_store %arg3[%c0_19, %c0_20], %53 {strides = array<i32>} : memref<8x128xf32, #tpu.memory_space<vmem>>, vector<8x128xf32>,
    return
  }
  func.func @transform_0(%arg0: i32) -> (i32, i32) {
    %c0_i32 = arith.constant 0 : i32
    %c0_i32_0 = arith.constant 0 : i32
    return %arg0, %c0_i32 : i32, i32
  }
  func.func @transform_1(%arg0: i32) -> (i32, i32) {
    %c0_i32 = arith.constant 0 : i32
    %c0_i32_0 = arith.constant 0 : i32
    %c0_i32_1 = arith.constant 0 : i32
    return %c0_i32, %c0_i32_0 : i32, i32
  }
  func.func @transform_2(%arg0: i32) -> (i32, i32) {
    %c0_i32 = arith.constant 0 : i32
    %c0_i32_0 = arith.constant 0 : i32
    return %arg0, %c0_i32 : i32, i32
  }
}

</mosaic_0001>

<bundles_post_ra>
// kernel: tpu_custom_call.1
= control target key start
LH: loop header
LB: loop body
LE: loop exit
PB: predicated region body
PF: predicated region fallthrough
CT: control target
= control target key end

     0   :  { %7 = vsyncpa [#allocation3], 0  ;;  %s801_s0 = inlined_call_operand.hbm [shape: f32[8,16], index: 0, kind: input, shape index: {}]   ;;  %s802_s1 = inlined_call_operand.hbm [shape: bf16[416,128], index: 1, kind: input, shape index: {}]   ;;  %s803_s2 = inlined_call_operand.hbm [shape: f32[8,128], index: 2, kind: output, shape index: {}]  }
   0x1   :  { %8 = vsyncpa [#allocation6], 0 }
   0x2   :  { %9 = vsyncpa [#allocation4], 0  ;;  %s692_s9 = smov [#allocation2]   ;;  %s693_s11 = smov [#allocation5]  }
   0x3   :  { %s16_s10 = sshll.u32 %s692_s9, 4  ;;  %s25_s12 = sshll.u32 %s693_s11, 4  ;;  %s17_s10 = int_to_ptr.vmem [resolvable:$true] %s16_s10  ;;  %s714_s12 = int_to_ptr.vmem [resolvable:$true] %s25_s12 }
   0x4   :  { %s620_s15 = scalar_lea.hbm %s801_s0, 128 }
   0x5   :  { %p621_p0 = scmp.ne.s32.totalorder %s801_s0, %s620_s15  ;;  %p624_p1 = scmp.lt.u32.totalorder %s620_s15, %s801_s0 }
   0x7   :  { %p626_p2 = pnand %p624_p1, %p621_p0 }
   0x9   :  { %629 = shalt.err (!%p626_p2)
}
   0xa   :  { %s630_s20 = scalar_lea.vmem %s17_s10, 128  ;;  %p635_p4 = scmp.lt.s32.totalorder %s17_s10, %s17_s10 }
   0xb   :  { %p631_p3 = scmp.ne.s32.totalorder %s17_s10, %s630_s20  ;;  %p636_p5 = scmp.lt.s32.totalorder %s630_s20, %s630_s20 }
   0xd   :  { %p637_p6 = por %p636_p5, %p635_p4 }
   0xf   :  { %p638_p7 = pnand %p637_p6, %p631_p3 }
  0x11   :  { %641 = shalt.err (!%p638_p7)
}
  0x12   :  { %19 = dma.hbm_to_vmem [thread:$0]  %s801_s0, 128, %s17_s10, [#allocation3]  }
  0x13   :  { %s642_s25 = scalar_lea.hbm %s802_s1, 3328 }
  0x14   :  { %p643_p8 = scmp.ne.s32.totalorder %s802_s1, %s642_s25  ;;  %p646_p9 = scmp.lt.u32.totalorder %s642_s25, %s802_s1 }
  0x16   :  { %p648_p10 = pnand %p646_p9, %p643_p8 }
  0x18   :  { %651 = shalt.err (!%p648_p10)
}
  0x19   :  { %s652_s30 = scalar_lea.vmem %s714_s12, 3328  ;;  %p657_p12 = scmp.lt.s32.totalorder %s714_s12, %s714_s12 }
  0x1a   :  { %p653_p11 = scmp.ne.s32.totalorder %s714_s12, %s652_s30  ;;  %p658_p13 = scmp.lt.s32.totalorder %s652_s30, %s652_s30 }
  0x1c   :  { %p659_p0 = por %p658_p13, %p657_p12 }
  0x1e   :  { %p660_p1 = pnand %p659_p0, %p653_p11 }
  0x20   :  { %663 = shalt.err (!%p660_p1)
}
  0x21   :  { %s694_s0 = smov 64   ;;  %s695_s3 = smov 4  }
  0x22   :  { %31 = dma.hbm_to_vmem [thread:$0]  %s802_s1, 3328, %s714_s12, [#allocation6], %s694_s0, %s694_s0, %s695_s3  }
  0x23   :  { %686 = dma.done.wait [#allocation3], 128  }
  0x24   :  { %687 = vsyncadd [#allocation3], 4294967168 }
  0x25   :  { %688 = dma.done.wait [#allocation6], 3328  }
  0x26   :  { %689 = vsyncadd [#allocation6], 4294963968  ;;  %v696_v0 = vmov 0.0   ;;  %vm697_vm0 = vmmov 0   ;;  %v591_v1 = vld [vmem:[#allocation5] sm:$0xff]   ;;  %v39_v2 = vld [vmem:[#allocation2] sm:$0xff]  ;;  %v45_v18 = vlaneseq }
  0x27   :  { %518 = vmatprep.subr.bf16.mxu0 %v696_v0  ;;  %520 = vmatprep.mubr.msk.bf16.mxu0 %vm697_vm0, %v696_v0  ;;  %v40_v3 = vpack.c.bf16 %v39_v2, %v39_v2  ;;  %vm55_vm1 = vcmask 130048   ;;  %v592_v4 = vld [vmem:[#allocation5 + $0x10] sm:$0xff]   ;;  %v593_v5 = vld [vmem:[#allocation5 + $0x18] sm:$0xff]   ;;  %v594_v6 = vld [vmem:[#allocation5 + $0x20] sm:$0xff]   ;;  %s698_s1 = smov [#allocation7]  }
  0x28   :  { %524 = vmatprep.subr.bf16.mxu1 %v696_v0  ;;  %540 = vmatprep.mubr.msk.bf16.mxu1 %vm697_vm0, %v696_v0  ;;  %v595_v7 = vld [vmem:[#allocation5 + $0x28] sm:$0xff]   ;;  %v596_v8 = vld [vmem:[#allocation5 + $0x30] sm:$0xff]   ;;  %v597_v9 = vld [vmem:[#allocation5 + $0x38] sm:$0xff]   ;;  %v769_v19 = vshrl.u32 %v45_v18, 7  ;;  %v430_v60 = vand.u32 127, %v45_v18  ;;  %s453_s6 = sshll.u32 %s698_s1, 4  ;;  %s454_s6 = int_to_ptr.vmem [resolvable:$true] %s453_s6 }
  0x29   :  { %519 = vmatpush3.bf16.msra.mxu0 %v591_v1  ;;  %525 = vmatpush3.bf16.msra.mxu1 %v592_v4  ;;  %v598_v10 = vld [vmem:[#allocation5 + $0x40] sm:$0xff]   ;;  %v599_v11 = vld [vmem:[#allocation5 + $0x48] sm:$0xff]   ;;  %v600_v12 = vld [vmem:[#allocation5 + $0x50] sm:$0xff]   ;;  %s664_s7 = scalar_lea.vmem %s454_s6, 128  ;;  %p669_p3 = scmp.lt.s32.totalorder %s454_s6, %s454_s6 }
  0x2a   :  { %544 = vmatprep.subr.bf16.mxu0 %v696_v0  ;;  %526 = vmatprep.subr.bf16.mxu1 %v696_v0  ;;  %v601_v13 = vld [vmem:[#allocation5 + $0x58] sm:$0xff]   ;;  %v602_v14 = vld [vmem:[#allocation5 + $0x60] sm:$0xff]   ;;  %v603_v15 = vld [vmem:[#allocation5 + $0x68] sm:$0xff]   ;;  %v47_v22 = vsub.s32 0, %v769_v19  ;;  %v119_v39 = vsub.s32 1, %v769_v19  ;;  %v229_v50 = vsub.s32 2, %v769_v19  ;;  %p665_p2 = scmp.ne.s32.totalorder %s454_s6, %s664_s7  ;;  %p670_p4 = scmp.lt.s32.totalorder %s664_s7, %s664_s7 }
  0x2b   :  { %v604_v16 = vld [vmem:[#allocation5 + $0x70] sm:$0xff]   ;;  %v605_v17 = vld [vmem:[#allocation5 + $0x78] sm:$0xff]   ;;  %v41_v20 = vld [vmem:[#allocation5 + $0x8] sm:$0xf]  ;;  %v339_v59 = vsub.s32 3, %v769_v19  ;;  %vm443_vm2 = vcmp.eq.s32.totalorder %v430_v60, 8 }
  0x2c   :  { %521 = vmatmul.mubr.msk.bf16.vlgmr.msra.gmra.mrb[0].mxu0 %vm55_vm1, %v40_v3  ;;  %v42_v21 = vunpack.c.l.bf16 %v41_v20  ;;  %v606_v31 = vld [vmem:[#allocation5 + $0x80] sm:$0xff]   ;;  %v607_v32 = vld [vmem:[#allocation5 + $0x88] sm:$0xff]   ;;  %v608_v33 = vld [vmem:[#allocation5 + $0x90] sm:$0xff]   ;;  %vm431_vm3 = vcmp.lt.s32.totalorder %v430_v60, 8  ;;  %p671_p5 = por %p670_p4, %p669_p3 }
  0x2d   :  { %560 = vmatprep.mubr.msk.bf16.mxu0 %vm697_vm0, %v696_v0  ;;  %527 = vmatpush3.bf16.msra.mxu1 %v593_v5  ;;  %v609_v34 = vld [vmem:[#allocation5 + $0x98] sm:$0xff]   ;;  %v610_v35 = vld [vmem:[#allocation5 + $0xa0] sm:$0xff]   ;;  %v611_v36 = vld [vmem:[#allocation5 + $0xa8] sm:$0xff]  }
  0x2e   :  { %528 = vmatprep.subr.bf16.mxu1 %v696_v0  ;;  %545 = vmatpush3.bf16.msra.mxu0 %v600_v12  ;;  %v48_v23 = vrot.slane %v42_v21, %v47_v22  ;;  %v612_v37 = vld [vmem:[#allocation5 + $0xb0] sm:$0xff]   ;;  %v613_v38 = vld [vmem:[#allocation5 + $0xb8] sm:$0xff]   ;;  %v120_v40 = vrot.slane %v42_v21, %v119_v39  ;;  %v614_v48 = vld [vmem:[#allocation5 + $0xc0] sm:$0xff]   ;;  %v230_v51 = vrot.slane %v42_v21, %v229_v50  ;;  %p672_p6 = pnand %p671_p5, %p665_p2 }
  0x2f   :  { %546 = vmatprep.subr.bf16.mxu0 %v696_v0  ;;  %v615_v49 = vld [vmem:[#allocation5 + $0xc8] sm:$0xff]   ;;  %v340_v61 = vrot.slane %v42_v21, %v339_v59 }
  0x31   :  { %529 = vmatpush3.bf16.msra.mxu1 %v594_v6 }
  0x32   :  { %530 = vmatprep.subr.bf16.mxu1 %v696_v0  ;;  %547 = vmatpush3.bf16.msra.mxu0 %v601_v13 }
  0x33   :  { %548 = vmatprep.subr.bf16.mxu0 %v696_v0 }
  0x35   :  { %531 = vmatpush3.bf16.msra.mxu1 %v595_v7 }
  0x36   :  { %532 = vmatprep.subr.bf16.mxu1 %v696_v0  ;;  %549 = vmatpush3.bf16.msra.mxu0 %v602_v14 }
  0x37   :  { %550 = vmatprep.subr.bf16.mxu0 %v696_v0 }
  0x39   :  { %533 = vmatpush3.bf16.msra.mxu1 %v596_v8 }
  0x3a   :  { %534 = vmatprep.subr.bf16.mxu1 %v696_v0  ;;  %551 = vmatpush3.bf16.msra.mxu0 %v603_v15 }
  0x3b   :  { %552 = vmatprep.subr.bf16.mxu0 %v696_v0 }
  0x3d   :  { %535 = vmatpush3.bf16.msra.mxu1 %v597_v9 }
  0x3e   :  { %536 = vmatprep.subr.bf16.mxu1 %v696_v0  ;;  %553 = vmatpush3.bf16.msra.mxu0 %v604_v16 }
  0x3f   :  { %554 = vmatprep.subr.bf16.mxu0 %v696_v0 }
  0x41   :  { %537 = vmatpush3.bf16.msra.mxu1 %v598_v10 }
  0x42   :  { %538 = vmatprep.subr.bf16.mxu1 %v696_v0  ;;  %555 = vmatpush3.bf16.msra.mxu0 %v605_v17 }
  0x43   :  { %556 = vmatprep.subr.bf16.mxu0 %v696_v0 }
  0x45   :  { %539 = vmatpush3.bf16.msra.mxu1 %v599_v11 }
  0x46   :  { %564 = vmatprep.subr.bf16.mxu1 %v696_v0  ;;  %557 = vmatpush3.bf16.msra.mxu0 %v606_v31 }
  0x47   :  { %558 = vmatprep.subr.bf16.mxu0 %v696_v0 }
  0x4a   :  { %559 = vmatpush3.bf16.msra.mxu0 %v607_v32 }
  0xff   :  { %v93_v24 = vpop.f32.mrb[0].mxu0 }
 0x100   :  { %v94_v25 = vadd.f32 %v93_v24, %v48_v23  ;;  %v522_v26 = vpop.f32.mrb[1].mxu0 }
 0x101   :  { %v96_v27 = vpop.f32.mrb[2].mxu0 }
 0x102   :  { %v99_v28 = vmax.f32 %v94_v25, 0.0  ;;  %v523_v29 = vpop.f32.mrb[3].mxu0 }
 0x104   :  { %v100_v30 = vpack.c.bf16 %v99_v28, %v99_v28 }
 0x106   :  { %541 = vmatmul.mubr.bf16.vlgmr.msra.gmra.mrb[0].mxu1 %v100_v30 }
 0x107   :  { %580 = vmatprep.mubr.msk.bf16.mxu1 %vm697_vm0, %v696_v0  ;;  %565 = vmatpush3.bf16.msra.mxu1 %v608_v33 }
 0x108   :  { %566 = vmatprep.subr.bf16.mxu1 %v696_v0 }
 0x10b   :  { %567 = vmatpush3.bf16.msra.mxu1 %v609_v34 }
 0x10c   :  { %568 = vmatprep.subr.bf16.mxu1 %v696_v0 }
 0x10f   :  { %569 = vmatpush3.bf16.msra.mxu1 %v610_v35 }
 0x110   :  { %570 = vmatprep.subr.bf16.mxu1 %v696_v0 }
 0x113   :  { %571 = vmatpush3.bf16.msra.mxu1 %v611_v36 }
 0x114   :  { %572 = vmatprep.subr.bf16.mxu1 %v696_v0 }
 0x117   :  { %573 = vmatpush3.bf16.msra.mxu1 %v612_v37 }
 0x118   :  { %574 = vmatprep.subr.bf16.mxu1 %v696_v0 }
 0x11b   :  { %575 = vmatpush3.bf16.msra.mxu1 %v613_v38 }
 0x11c   :  { %576 = vmatprep.subr.bf16.mxu1 %v696_v0 }
 0x11f   :  { %577 = vmatpush3.bf16.msra.mxu1 %v614_v48 }
 0x120   :  { %578 = vmatprep.subr.bf16.mxu1 %v696_v0 }
 0x123   :  { %579 = vmatpush3.bf16.msra.mxu1 %v615_v49 }
 0x1d9   :  { %v203_v41 = vpop.f32.mrb[0].mxu1 }
 0x1da   :  { %v204_v42 = vadd.f32 %v203_v41, %v120_v40  ;;  %v542_v43 = vpop.f32.mrb[1].mxu1 }
 0x1db   :  { %v206_v44 = vpop.f32.mrb[2].mxu1 }
 0x1dc   :  { %v209_v45 = vmax.f32 %v204_v42, 0.0  ;;  %v543_v46 = vpop.f32.mrb[3].mxu1 }
 0x1de   :  { %v210_v47 = vpack.c.bf16 %v209_v45, %v209_v45 }
 0x1e0   :  { %561 = vmatmul.mubr.bf16.vlgmr.msra.gmra.mrb[4].mxu0 %v210_v47 }
 0x2b3   :  { %v313_v52 = vpop.f32.mrb[4].mxu0 }
 0x2b4   :  { %v314_v53 = vadd.f32 %v313_v52, %v230_v51  ;;  %v562_v54 = vpop.f32.mrb[5].mxu0 }
 0x2b5   :  { %v316_v55 = vpop.f32.mrb[6].mxu0 }
 0x2b6   :  { %v319_v56 = vmax.f32 %v314_v53, 0.0  ;;  %v563_v57 = vpop.f32.mrb[7].mxu0 }
 0x2b8   :  { %v320_v58 = vpack.c.bf16 %v319_v56, %v319_v56 }
 0x2ba   :  { %581 = vmatmul.mubr.bf16.vlgmr.msra.gmra.mrb[4].mxu1 %v320_v58 }
 0x38d   :  { %v423_v62 = vpop.f32.mrb[4].mxu1 }
 0x38e   :  { %v424_v63 = vadd.f32 %v423_v62, %v340_v61  ;;  %v582_v0 = vpop.f32.mrb[5].mxu1 }
 0x38f   :  { %v426_v1 = vpop.f32.mrb[6].mxu1 }
 0x390   :  { %v444_v2 = vsel %vm443_vm2, %v424_v63, 0.0  ;;  %v583_v3 = vpop.f32.mrb[7].mxu1  ;;  %v432_v4 = vsel %vm431_vm3, %v424_v63, -1e+30 }
 0x391   :  { %433 = vmax.xlane.f32.xlu0 %v432_v4 }
 0x41e   :  { %v434_v5 = vpop.xlane.xlu0 %433 }
 0x41f   :  { %v435_v6 = vsub.f32 %v432_v4, %v434_v5 }
 0x421   :  { %v436_v7 = vmul.f32 1.442695, %v435_v6 }
 0x423   :  { %616 = vpow2.f32 %v436_v7 }
 0x42d   :  { %v617_v8 = vpop.eup %616 }
 0x42e   :  { %v438_v9 = vsel %vm431_vm3, %v617_v8, 0.0 }
 0x42f   :  { %439 = vadd.xlane.f32.xlu0 %v438_v9 }
 0x4bc   :  { %v440_v10 = vpop.xlane.xlu0 %439 }
 0x4bd   :  { %618 = vrcp.f32 %v440_v10 }
 0x4c7   :  { %v619_v11 = vpop.eup %618 }
 0x4c8   :  { %v442_v12 = vmul.f32 %v619_v11, %v438_v9 }
 0x4ca   :  { %v445_v13 = vsel %vm431_vm3, %v442_v12, %v444_v2 }
 0x4cb   :  { %446 = vst [vmem:[#allocation7] sm:$0xff] %v445_v13 }
 0x4cc   :  { %675 = shalt.err (!%p672_p6)
}
 0x4cd   :  { %s676_s10 = scalar_lea.hbm %s803_s2, 128 }
 0x4ce   :  { %p677_p7 = scmp.ne.s32.totalorder %s803_s2, %s676_s10  ;;  %p680_p8 = scmp.lt.u32.totalorder %s676_s10, %s803_s2 }
 0x4d0   :  { %p682_p9 = pnand %p680_p8, %p677_p7 }
 0x4d2   :  { %685 = shalt.err (!%p682_p9)
}
 0x4d3   :  { %456 = dma.vmem_to_hbm [thread:$0]  %s454_s6, 128, %s803_s2, [#allocation4]  }
 0x4d4   :  { %690 = dma.done.wait [#allocation4], 128  }
 0x4d5   :  { %691 = vsyncadd [#allocation4], 4294967168 }
 0x4d6   :  { %460 = vsyncpa [#allocation3], 1 }
 0x4d7   :  { %461 = vsyncpa [#allocation6], 1 }
 0x4d8   :  { %462 = vsyncpa [#allocation4], 1 }

</bundles_post_ra>
